<compile_context>
chip_gen: v6e
topology: v6e:2x2x1
jax: 0.10.0
libtpu: 0.0.40
codegen_flags: <defaults>
</compile_context>

<pallas_src>
import jax
import jax.numpy as jnp
from jax.experimental import pallas as pl
from jax.experimental.pallas import tpu as pltpu


def _round_up(x, m):
    return ((x + m - 1) // m) * m


def _spec(shape, index_map, *, single_buffer=False):
    """BlockSpec helper; resident (constant-index) blocks get a single VMEM buffer."""
    if single_buffer:
        return pl.BlockSpec(shape, index_map, pipeline_mode=pl.Buffered(1))
    return pl.BlockSpec(shape, index_map)


def _head_kernel(x_ref, w1_ref, b1_ref, w2_ref, b2_ref, out_ref, acc_ref):
    # grid = (nb, nk); k is the reduction over the embedding dim (nk == 1 when W1 is
    # fully VMEM-resident, which is the common case).
    #   x_ref:  (TB, TK)       bf16   activation tile
    #   w1_ref: (TK, E_pad)    bf16
    #   b1_ref: (1, E_pad)     f32
    #   w2_ref: (E_pad, L_pad) bf16
    #   b2_ref: (1, L_pad)     f32
    #   out_ref:(TB, L_pad)    f32
    #   acc_ref:(TB, E_pad)    f32    scratch accumulator
    k = pl.program_id(1)

    @pl.when(k == 0)
    def _():
        acc_ref[...] = jnp.zeros_like(acc_ref)

    acc_ref[...] += jnp.dot(x_ref[...], w1_ref[...],
                            preferred_element_type=jnp.float32)

    @pl.when(k == pl.num_programs(1) - 1)
    def _():
        # pooling = tanh(Linear(cls)); bias add + tanh in f32.
        h = jnp.tanh(acc_ref[...] + b1_ref[...])
        # dropout: eval-mode identity.
        # TODO(synk): training-mode dropout would need pltpu.prng_seed +
        # pltpu.prng_random_bits mask here.
        logits = jnp.dot(h.astype(jnp.bfloat16), w2_ref[...],
                         preferred_element_type=jnp.float32) + b2_ref[...]
        out_ref[...] = logits.astype(out_ref.dtype)


def prepare_head_params(w1, b1, w2, b2):
    """One-time parameter prep: pad to lane-dense multiples of 128 and cast matmul
    operands to bf16.  Cache the result — doing this per forward call was the dominant
    wrapper cost (extra XLA ops + an HBM write/read of both weight matrices)."""
    E = w1.shape[0]
    L = w2.shape[1]
    E_pad = _round_up(E, 128)
    L_pad = _round_up(L, 128)

    if E == E_pad:
        w1_p = w1.astype(jnp.bfloat16)
    else:
        w1_p = jnp.zeros((E_pad, E_pad), jnp.bfloat16).at[:E, :E].set(
            w1.astype(jnp.bfloat16))
    b1_p = jnp.zeros((1, E_pad), jnp.float32).at[0, :E].set(b1.astype(jnp.float32))

    if E == E_pad and L == L_pad:
        w2_p = w2.astype(jnp.bfloat16)
    else:
        w2_p = jnp.zeros((E_pad, L_pad), jnp.bfloat16).at[:E, :L].set(
            w2.astype(jnp.bfloat16))
    b2_p = jnp.zeros((1, L_pad), jnp.float32).at[0, :L].set(b2.astype(jnp.float32))

    return {"w1": w1_p, "b1": b1_p, "w2": w2_p, "b2": b2_p,
            "emb_dim": E, "n_labels": L}


def bert_classifier_head(cls_tok, head_params, *, tb_max=None):
    """cls_tok: (B, E) float32.  head_params: output of prepare_head_params.
    Returns logits (B, n_labels) float32."""
    B, E = cls_tok.shape
    L = head_params["n_labels"]
    assert E == head_params["emb_dim"]
    w1_p, b1_p = head_params["w1"], head_params["b1"]
    w2_p, b2_p = head_params["w2"], head_params["b2"]
    E_pad = w1_p.shape[0]
    L_pad = w2_p.shape[1]

    # ---- batch tiling --------------------------------------------------------
    # v6e/v7x MXU is 2x256^2 -> 256-row tiles amortize fill/drain (pass tb_max=128 on
    # v5e, whose MXU is 4x128^2).  Always split into >=2 grid steps when B allows so the
    # "parallel" batch axis can shard across v7x's 2 TensorCores and pipelining exists.
    if tb_max is None:
        tb_max = 256 if B >= 256 else 128
    B8 = _round_up(B, 8)
    if B8 <= 8:
        TB = B8                                   # too small to split usefully
    else:
        TB = min(tb_max, _round_up(pl.cdiv(B8, 2), 8))
    B_pad = _round_up(B, TB)
    nb = B_pad // TB

    # ---- K tiling guard (v7x has only 64 MiB VMEM) ---------------------------
    # Keep W1 fully resident only while it is small; otherwise stream it along a
    # reduction ("arbitrary") axis into the f32 accumulator.
    if E_pad * E_pad * 2 <= 8 * 1024 * 1024:      # E_pad <= 2048: resident
        TK = E_pad
    else:
        TK = max(d for d in (1024, 512, 256, 128) if E_pad % d == 0)
    nk = E_pad // TK

    # ---- activations: avoid the pad round-trip when already aligned ----------
    if B == B_pad and E == E_pad:
        x_p = cls_tok.astype(jnp.bfloat16)        # no extra HBM copy
    else:
        x_p = jnp.zeros((B_pad, E_pad), jnp.bfloat16).at[:B, :E].set(
            cls_tok.astype(jnp.bfloat16))

    cost = pl.CostEstimate(
        flops=2 * B_pad * E_pad * E_pad + 2 * B_pad * E_pad * L_pad,
        transcendentals=B_pad * E_pad,
        bytes_accessed=(x_p.size * 2 + w1_p.size * 2 + w2_p.size * 2
                        + b1_p.size * 4 + b2_p.size * 4 + B_pad * L_pad * 4),
    )

    out_pad = pl.pallas_call(
        _head_kernel,
        out_shape=jax.ShapeDtypeStruct((B_pad, L_pad), jnp.float32),
        grid_spec=pltpu.PrefetchScalarGridSpec(
            num_scalar_prefetch=0,
            grid=(nb, nk),
            in_specs=[
                # activations: tiled over batch and (optionally) K
                _spec((TB, TK), lambda i, k: (i, k)),
                # W1: resident (single buffer) when nk == 1, streamed over K otherwise
                _spec((TK, E_pad), lambda i, k: (k, 0), single_buffer=(nk == 1)),
                # b1 / W2 / b2: always resident -> single buffer
                _spec((1, E_pad), lambda i, k: (0, 0), single_buffer=True),
                _spec((E_pad, L_pad), lambda i, k: (0, 0), single_buffer=True),
                _spec((1, L_pad), lambda i, k: (0, 0), single_buffer=True),
            ],
            out_specs=pl.BlockSpec((TB, L_pad), lambda i, k: (i, 0)),
            scratch_shapes=[pltpu.VMEM((TB, E_pad), jnp.float32)],
        ),
        compiler_params=pltpu.CompilerParams(
            dimension_semantics=("parallel", "arbitrary"),
            vmem_limit_bytes=32 * 1024 * 1024,
        ),
        cost_estimate=cost,
    )(x_p, w1_p, b1_p, w2_p, b2_p)

    # Padded batch rows hold garbage logits and padded label columns are unused; both
    # are discarded here and must never be consumed upstream of this slice.
    return out_pad[:B, :L]


def bert_stub(token_ids, segment_label, tok_emb, seg_emb, pos_emb):
    """Full deterministic stand-in for the BERT backbone (reference only)."""
    return tok_emb[token_ids] + seg_emb[segment_label] + pos_emb[None, :, :]


def bert_stub_cls(token_ids, segment_label, tok_emb, seg_emb, pos_emb):
    """Fused CLS path: compute only bert_output[:, 0] (B, E) — never builds (B, S, E)."""
    return tok_emb[token_ids[:, 0]] + seg_emb[segment_label[:, 0]] + pos_emb[0][None, :]


def bert_classifier_forward(token_ids, segment_label, params, head_params):
    # TODO(synk): real BERT transformer backbone is external / unspecified; embedding-sum
    # stand-in used, with only the CLS row materialized.
    cls_tok = bert_stub_cls(
        token_ids, segment_label,
        params["tok_emb"], params["seg_emb"], params["pos_emb"],
    )
    return bert_classifier_head(cls_tok, head_params)


if __name__ == "__main__":
    B, S, E = 2, 8, 32        # batch, seq, emb_dim
    vocab, n_segments, n_labels = 64, 3, 8

    key = jax.random.PRNGKey(0)
    ks = jax.random.split(key, 8)

    params = {
        # BERT-stub embeddings
        "tok_emb": jax.random.normal(ks[0], (vocab, E), jnp.float32) * 0.02,
        "seg_emb": jax.random.normal(ks[1], (n_segments, E), jnp.float32) * 0.02,
        "pos_emb": jax.random.normal(ks[2], (S, E), jnp.float32) * 0.02,
        # linear_layer: nn.Linear(E, E)  (stored pre-transposed: (in, out))
        "w1": jax.random.normal(ks[3], (E, E), jnp.float32) * 0.05,
        "b1": jax.random.normal(ks[4], (E,), jnp.float32) * 0.05,
        # classifier: nn.Linear(E, n_labels)
        "w2": jax.random.normal(ks[5], (E, n_labels), jnp.float32) * 0.05,
        "b2": jax.random.normal(ks[6], (n_labels,), jnp.float32) * 0.05,
    }

    # One-time (cached) head-parameter preparation: padding + bf16 cast happen here,
    # not per forward call.
    head_params = prepare_head_params(params["w1"], params["b1"],
                                      params["w2"], params["b2"])
    head_params = jax.block_until_ready(head_params)

    token_ids = jax.random.randint(ks[7], (B, S), 0, vocab, dtype=jnp.int32)
    segment_label = jnp.concatenate(
        [jnp.zeros((B, S // 2), jnp.int32), jnp.ones((B, S // 2), jnp.int32)], axis=1
    )

    logits = bert_classifier_forward(token_ids, segment_label, params, head_params)
    logits = jax.block_until_ready(logits)

    # Reference check in plain f32 JAX (tolerance loosened for bf16 matmul operands).
    bert_out = bert_stub(token_ids, segment_label,
                         params["tok_emb"], params["seg_emb"], params["pos_emb"])
    cls = bert_out[:, 0]
    ref = jnp.tanh(cls @ params["w1"] + params["b1"]) @ params["w2"] + params["b2"]
    assert logits.shape == (B, n_labels)
    assert jnp.allclose(logits, ref, atol=1e-2, rtol=1e-2)

    print("KERNEL_OK")
</pallas_src>

<mosaic_0001>
module attributes {stable_mosaic.version = 11 : i64} {
  func.func @_head_kernel(%arg0: i32, %arg1: i32, %arg2: memref<8x128xbf16, #tpu.memory_space<vmem>>, %arg3: memref<128x128xbf16, #tpu.memory_space<vmem>>, %arg4: memref<1x128xf32, #tpu.memory_space<vmem>>, %arg5: memref<128x128xbf16, #tpu.memory_space<vmem>>, %arg6: memref<1x128xf32, #tpu.memory_space<vmem>>, %arg7: memref<8x128xf32, #tpu.memory_space<vmem>>, %arg8: memref<8x128xf32, #tpu.memory_space<vmem>>) attributes {dimension_semantics = [#tpu.dimension_semantics<parallel>, #tpu.dimension_semantics<arbitrary>], iteration_bounds = array<i64: 1, 1>, scalar_prefetch = 0 : i64, scratch_operands = 1 : i64, tpu.core_type = #tpu.core_type<tc>, window_params = [{transform_indices = @transform_0, window_bounds = array<i64: 8, 128>}, {pipeline_mode = #tpu.pipeline_mode<synchronous>, transform_indices = @transform_1, window_bounds = array<i64: 128, 128>}, {pipeline_mode = #tpu.pipeline_mode<synchronous>, transform_indices = @transform_2, window_bounds = array<i64: 1, 128>}, {pipeline_mode = #tpu.pipeline_mode<synchronous>, transform_indices = @transform_3, window_bounds = array<i64: 128, 128>}, {pipeline_mode = #tpu.pipeline_mode<synchronous>, transform_indices = @transform_4, window_bounds = array<i64: 1, 128>}, {transform_indices = @transform_5, window_bounds = array<i64: 8, 128>}]} {
    %c0_i32 = arith.constant 0 : i32
    %0 = arith.cmpi eq, %arg1, %c0_i32 : i32
    %1 = arith.extui %0 : i1 to i32
    %c0_i32_0 = arith.constant 0 : i32
    %2 = arith.cmpi ne, %1, %c0_i32_0 : i32
    scf.if %2 {
      %cst_10 = arith.constant 0.000000e+00 : f32
      %12 = vector.broadcast %cst_10 : f32 to vector<8x128xf32>
      %c0_11 = arith.constant 0 : index
      %c0_12 = arith.constant 0 : index
      %13 = vector.load %arg8[%c0_11, %c0_12] : memref<8x128xf32, #tpu.memory_space<vmem>>, vector<8x128xf32>
      tpu.vector_store %arg8[%c0_11, %c0_12], %12 {strides = array<i32>} : memref<8x128xf32, #tpu.memory_space<vmem>>, vector<8x128xf32>,
    } else {
    }
    %c0 = arith.constant 0 : index
    %c0_1 = arith.constant 0 : index
    %3 = vector.load %arg8[%c0, %c0_1] : memref<8x128xf32, #tpu.memory_space<vmem>>, vector<8x128xf32>
    %c0_2 = arith.constant 0 : index
    %c0_3 = arith.constant 0 : index
    %4 = vector.load %arg2[%c0_2, %c0_3] : memref<8x128xbf16, #tpu.memory_space<vmem>>, vector<8x128xbf16>
    %c0_4 = arith.constant 0 : index
    %c0_5 = arith.constant 0 : index
    %5 = vector.load %arg3[%c0_4, %c0_5] : memref<128x128xbf16, #tpu.memory_space<vmem>>, vector<128x128xbf16>
    %cst = arith.constant dense<0.000000e+00> : vector<8x128xf32>
    %6 = tpu.matmul %4, %5, %cst {dimension_numbers = #tpu.dot_dimension_numbers<[1], [0], [0], [1], [0, 0, 1, 1], [], []>} : vector<8x128xbf16>, vector<128x128xbf16>, vector<8x128xf32> -> vector<8x128xf32>
    %7 = arith.addf %3, %6 : vector<8x128xf32>
    %c0_6 = arith.constant 0 : index
    %c0_7 = arith.constant 0 : index
    %8 = vector.load %arg8[%c0_6, %c0_7] : memref<8x128xf32, #tpu.memory_space<vmem>>, vector<8x128xf32>
    tpu.vector_store %arg8[%c0_6, %c0_7], %7 {strides = array<i32>} : memref<8x128xf32, #tpu.memory_space<vmem>>, vector<8x128xf32>,
    %c0_i32_8 = arith.constant 0 : i32
    %9 = arith.cmpi eq, %arg1, %c0_i32_8 : i32
    %10 = arith.extui %9 : i1 to i32
    %c0_i32_9 = arith.constant 0 : i32
    %11 = arith.cmpi ne, %10, %c0_i32_9 : i32
    scf.if %11 {
      %c0_10 = arith.constant 0 : index
      %c0_11 = arith.constant 0 : index
      %12 = vector.load %arg8[%c0_10, %c0_11] : memref<8x128xf32, #tpu.memory_space<vmem>>, vector<8x128xf32>
      %c0_12 = arith.constant 0 : index
      %c0_13 = arith.constant 0 : index
      %13 = vector.load %arg4[%c0_12, %c0_13] : memref<1x128xf32, #tpu.memory_space<vmem>>, vector<1x128xf32>
      %14 = vector.broadcast %13 : vector<1x128xf32> to vector<8x128xf32>
      %15 = arith.addf %12, %14 : vector<8x128xf32>
      %16 = math.tanh %15 : vector<8x128xf32>
      %17 = arith.truncf %16 : vector<8x128xf32> to vector<8x128xbf16>
      %c0_14 = arith.constant 0 : index
      %c0_15 = arith.constant 0 : index
      %18 = vector.load %arg5[%c0_14, %c0_15] : memref<128x128xbf16, #tpu.memory_space<vmem>>, vector<128x128xbf16>
      %cst_16 = arith.constant dense<0.000000e+00> : vector<8x128xf32>
      %19 = tpu.matmul %17, %18, %cst_16 {dimension_numbers = #tpu.dot_dimension_numbers<[1], [0], [0], [1], [0, 0, 1, 1], [], []>} : vector<8x128xbf16>, vector<128x128xbf16>, vector<8x128xf32> -> vector<8x128xf32>
      %c0_17 = arith.constant 0 : index
      %c0_18 = arith.constant 0 : index
      %20 = vector.load %arg6[%c0_17, %c0_18] : memref<1x128xf32, #tpu.memory_space<vmem>>, vector<1x128xf32>
      %21 = vector.broadcast %20 : vector<1x128xf32> to vector<8x128xf32>
      %22 = arith.addf %19, %21 : vector<8x128xf32>
      %c0_19 = arith.constant 0 : index
      %c0_20 = arith.constant 0 : index
      %23 = vector.load %arg7[%c0_19, %c0_20] : memref<8x128xf32, #tpu.memory_space<vmem>>, vector<8x128xf32>
      tpu.vector_store %arg7[%c0_19, %c0_20], %22 {strides = array<i32>} : memref<8x128xf32, #tpu.memory_space<vmem>>, vector<8x128xf32>,
    } else {
    }
    return
  }
  func.func @transform_0(%arg0: i32, %arg1: i32) -> (i32, i32) {
    %c0_i32 = arith.constant 0 : i32
    return %arg0, %arg1 : i32, i32
  }
  func.func @transform_1(%arg0: i32, %arg1: i32) -> (i32, i32) {
    %c0_i32 = arith.constant 0 : i32
    %c0_i32_0 = arith.constant 0 : i32
    return %arg1, %c0_i32 : i32, i32
  }
  func.func @transform_2(%arg0: i32, %arg1: i32) -> (i32, i32) {
    %c0_i32 = arith.constant 0 : i32
    %c0_i32_0 = arith.constant 0 : i32
    %c0_i32_1 = arith.constant 0 : i32
    return %c0_i32, %c0_i32_0 : i32, i32
  }
  func.func @transform_3(%arg0: i32, %arg1: i32) -> (i32, i32) {
    %c0_i32 = arith.constant 0 : i32
    %c0_i32_0 = arith.constant 0 : i32
    %c0_i32_1 = arith.constant 0 : i32
    return %c0_i32, %c0_i32_0 : i32, i32
  }
  func.func @transform_4(%arg0: i32, %arg1: i32) -> (i32, i32) {
    %c0_i32 = arith.constant 0 : i32
    %c0_i32_0 = arith.constant 0 : i32
    %c0_i32_1 = arith.constant 0 : i32
    return %c0_i32, %c0_i32_0 : i32, i32
  }
  func.func @transform_5(%arg0: i32, %arg1: i32) -> (i32, i32) {
    %c0_i32 = arith.constant 0 : i32
    %c0_i32_0 = arith.constant 0 : i32
    return %arg0, %c0_i32 : i32, i32
  }
}

</mosaic_0001>

<bundles_post_ra>
// kernel: tpu_custom_call.1
= control target key start
LH: loop header
LB: loop body
LE: loop exit
PB: predicated region body
PF: predicated region fallthrough
CT: control target
= control target key end

     0   :  { %10 = vsyncpa [#allocation4], 0  ;;  %s560_s0 = inlined_call_operand.hbm [shape: bf16[8,128], index: 0, kind: input, shape index: {}]   ;;  %s561_s1 = inlined_call_operand.hbm [shape: bf16[128,128], index: 1, kind: input, shape index: {}]   ;;  %s562_s2 = inlined_call_operand.vmem [shape: f32[1,128], index: 2, kind: input, shape index: {}]   ;;  %s563_s3 = inlined_call_operand.hbm [shape: bf16[128,128], index: 3, kind: input, shape index: {}]   ;;  %s564_s4 = inlined_call_operand.vmem [shape: f32[1,128], index: 4, kind: input, shape index: {}]   ;;  %s565_s5 = inlined_call_operand.hbm [shape: f32[8,128], index: 5, kind: output, shape index: {}]  }
   0x1   :  { %11 = vsyncpa [#allocation7], 0 }
   0x2   :  { %12 = vsyncpa [#allocation5], 0  ;;  %s504_s18 = smov [#allocation6]  }
   0x3   :  { %s28_s19 = sshll.u32 %s504_s18, 4  ;;  %s29_s19 = int_to_ptr.vmem [resolvable:$true] %s28_s19 }
   0x4   :  { %s426_s20 = scalar_lea.vmem %s29_s19, 1024  ;;  %p431_p1 = scmp.lt.s32.totalorder %s29_s19, %s29_s19 }
   0x5   :  { %p427_p0 = scmp.ne.s32.totalorder %s29_s19, %s426_s20  ;;  %p432_p2 = scmp.lt.s32.totalorder %s426_s20, %s426_s20 }
   0x7   :  { %p433_p3 = por %p432_p2, %p431_p1 }
   0x9   :  { %p434_p4 = pnand %p433_p3, %p427_p0 }
   0xb   :  { %437 = shalt.err (!%p434_p4)
}
   0xc   :  { %s505_s21 = smov 64   ;;  %s506_s22 = smov 4  }
   0xd   :  { %34 = dma.hbm_to_vmem [thread:$0]  %s561_s1, 1024, %s29_s19, [#allocation7], %s505_s21, %s505_s21, %s506_s22  }
   0xe   :  { %s507_s25 = smov [#allocation3]   ;;  %s508_s27 = smov [#allocation8]  }
   0xf   :  { %s19_s26 = sshll.u32 %s507_s25, 4  ;;  %s42_s28 = sshll.u32 %s508_s27, 4  ;;  %s20_s26 = int_to_ptr.vmem [resolvable:$true] %s19_s26  ;;  %s43_s28 = int_to_ptr.vmem [resolvable:$true] %s42_s28 }
  0x10   :  { %s446_s29 = scalar_lea.vmem %s20_s26, 64  ;;  %p451_p6 = scmp.lt.s32.totalorder %s20_s26, %s20_s26 }
  0x11   :  { %p447_p5 = scmp.ne.s32.totalorder %s20_s26, %s446_s29  ;;  %p452_p7 = scmp.lt.s32.totalorder %s446_s29, %s446_s29 }
  0x13   :  { %p453_p8 = por %p452_p7, %p451_p6 }
  0x15   :  { %p454_p9 = pnand %p453_p8, %p447_p5 }
  0x17   :  { %457 = shalt.err (!%p454_p9)
}
  0x18   :  { %22 = dma.hbm_to_vmem [thread:$0]  %s560_s0, 64, %s20_s26, [#allocation4]  }
  0x19   :  { %s466_s7 = scalar_lea.vmem %s43_s28, 1024  ;;  %p471_p11 = scmp.lt.s32.totalorder %s43_s28, %s43_s28 }
  0x1a   :  { %p467_p10 = scmp.ne.s32.totalorder %s43_s28, %s466_s7  ;;  %p472_p12 = scmp.lt.s32.totalorder %s466_s7, %s466_s7 }
  0x1c   :  { %p473_p13 = por %p472_p12, %p471_p11 }
  0x1e   :  { %p474_p0 = pnand %p473_p13, %p467_p10 }
  0x20   :  { %477 = shalt.err (!%p474_p0)
}
  0x21   :  { %48 = dma.hbm_to_vmem [thread:$0]  %s563_s3, 1024, %s43_s28, [#allocation7], %s505_s21, %s505_s21, %s506_s22  }
  0x22   :  { %498 = dma.done.wait [#allocation4], 64  }
  0x23   :  { %499 = vsyncadd [#allocation4], 4294967232 }
  0x24   :  { %500 = dma.done.wait [#allocation7], 2048  }
  0x25   :  { %501 = vsyncadd [#allocation7], 4294965248  ;;  %v509_v0 = vmov 0.0   ;;  %vm510_vm0 = vmmov 0   ;;  %v400_v1 = vld [vmem:[#allocation6 + $0x38] sm:$0xff]   ;;  %v401_v2 = vld [vmem:[#allocation6 + $0x30] sm:$0xff]  }
  0x26   :  { %352 = vmatprep.subr.bf16.mxu0 %v509_v0  ;;  %368 = vmatprep.mubr.msk.bf16.mxu0 %vm510_vm0, %v509_v0  ;;  %v402_v3 = vld [vmem:[#allocation6 + $0x28] sm:$0xff]   ;;  %v408_v4 = vld [vmem:[#allocation8 + $0x38] sm:$0xff]   ;;  %v403_v5 = vld [vmem:[#allocation6 + $0x20] sm:$0xff]   ;;  %s511_s11 = smov [#allocation9]  }
  0x27   :  { %372 = vmatprep.subr.bf16.mxu1 %v509_v0  ;;  %388 = vmatprep.mubr.msk.bf16.mxu1 %vm510_vm0, %v509_v0  ;;  %v409_v6 = vld [vmem:[#allocation8 + $0x30] sm:$0xff]   ;;  %v404_v7 = vld [vmem:[#allocation6 + $0x18] sm:$0xff]   ;;  %v410_v8 = vld [vmem:[#allocation8 + $0x28] sm:$0xff]   ;;  %s306_s12 = sshll.u32 %s511_s11, 4  ;;  %s307_s12 = int_to_ptr.vmem [resolvable:$true] %s306_s12 }
  0x28   :  { %353 = vmatpush3.bf16.msra.mxu0 %v400_v1  ;;  %373 = vmatpush3.bf16.msra.mxu1 %v408_v4  ;;  %v405_v9 = vld [vmem:[#allocation6 + $0x10] sm:$0xff]   ;;  %v406_v10 = vld [vmem:[#allocation6 + $0x8] sm:$0xff]   ;;  %v407_v11 = vld [vmem:[#allocation6] sm:$0xff]   ;;  %p483_p2 = scmp.lt.s32.totalorder %s307_s12, %s307_s12 }
  0x29   :  { %354 = vmatprep.subr.bf16.mxu0 %v509_v0  ;;  %374 = vmatprep.subr.bf16.mxu1 %v509_v0  ;;  %v67_v12 = vld [vmem:[#allocation3] sm:$0xf]  ;;  %v411_v13 = vld [vmem:[#allocation8 + $0x20] sm:$0xff]   ;;  %v413_v15 = vld [vmem:[#allocation8 + $0x10] sm:$0xff]  }
  0x2a   :  { %v412_v14 = vld [vmem:[#allocation8 + $0x18] sm:$0xff]   ;;  %v414_v16 = vld [vmem:[#allocation8 + $0x8] sm:$0xff]   ;;  %v415_v17 = vld [vmem:[#allocation8] sm:$0xff]  }
  0x2b   :  { %v324_v18 = vld [vmem:[%s562_s2] ss:$0 sm:$0xff]  ;;  %s478_s2 = scalar_lea.vmem %s307_s12, 128 }
  0x2c   :  { %355 = vmatpush3.bf16.msra.mxu0 %v401_v2  ;;  %375 = vmatpush3.bf16.msra.mxu1 %v409_v6  ;;  %v325_v26 = vld [vmem:[%s564_s4] ss:$0 sm:$0xff]  ;;  %p479_p1 = scmp.ne.s32.totalorder %s307_s12, %s478_s2  ;;  %p484_p3 = scmp.lt.s32.totalorder %s478_s2, %s478_s2 }
  0x2d   :  { %356 = vmatprep.subr.bf16.mxu0 %v509_v0  ;;  %376 = vmatprep.subr.bf16.mxu1 %v509_v0 }
  0x2e   :  { %p485_p4 = por %p484_p3, %p483_p2 }
  0x30   :  { %357 = vmatpush3.bf16.msra.mxu0 %v402_v3  ;;  %377 = vmatpush3.bf16.msra.mxu1 %v410_v8  ;;  %p486_p5 = pnand %p485_p4, %p479_p1 }
  0x31   :  { %358 = vmatprep.subr.bf16.mxu0 %v509_v0  ;;  %378 = vmatprep.subr.bf16.mxu1 %v509_v0 }
  0x34   :  { %359 = vmatpush3.bf16.msra.mxu0 %v403_v5  ;;  %379 = vmatpush3.bf16.msra.mxu1 %v411_v13 }
  0x35   :  { %360 = vmatprep.subr.bf16.mxu0 %v509_v0  ;;  %380 = vmatprep.subr.bf16.mxu1 %v509_v0 }
  0x38   :  { %361 = vmatpush3.bf16.msra.mxu0 %v404_v7  ;;  %381 = vmatpush3.bf16.msra.mxu1 %v412_v14 }
  0x39   :  { %362 = vmatprep.subr.bf16.mxu0 %v509_v0  ;;  %382 = vmatprep.subr.bf16.mxu1 %v509_v0 }
  0x3c   :  { %363 = vmatpush3.bf16.msra.mxu0 %v405_v9  ;;  %383 = vmatpush3.bf16.msra.mxu1 %v413_v15 }
  0x3d   :  { %364 = vmatprep.subr.bf16.mxu0 %v509_v0  ;;  %384 = vmatprep.subr.bf16.mxu1 %v509_v0 }
  0x40   :  { %365 = vmatpush3.bf16.msra.mxu0 %v406_v10  ;;  %385 = vmatpush3.bf16.msra.mxu1 %v414_v16 }
  0x41   :  { %366 = vmatprep.subr.bf16.mxu0 %v509_v0  ;;  %386 = vmatprep.subr.bf16.mxu1 %v509_v0 }
  0x44   :  { %367 = vmatpush3.bf16.msra.mxu0 %v407_v11  ;;  %387 = vmatpush3.bf16.msra.mxu1 %v415_v17 }
  0x47   :  { %369 = vmatmul.mubr.bf16.vlgmr.msra.gmra.mxu0 %v67_v12 }
 0x107   :  { %v166_v19 = vpop.f32.mrf.mxu0 }
 0x108   :  { %v185_v20 = vadd.f32 %v324_v18, %v166_v19 }
 0x109   :  { %v370_v21 = vpop.f32.mrf.mxu0 }
 0x10a   :  { %416 = vtanh.f32 %v185_v20 }
 0x10b   :  { %v169_v22 = vpop.f32.mrf.mxu0 }
 0x10d   :  { %v371_v23 = vpop.f32.mrf.mxu0 }
 0x117   :  { %v417_v24 = vpop.eup %416 }
 0x118   :  { %v187_v25 = vpack.c.bf16 %v417_v24, %v417_v24 }
 0x11a   :  { %389 = vmatmul.mubr.bf16.vlgmr.msra.gmra.mxu1 %v187_v25 }
 0x1da   :  { %v293_v27 = vpop.f32.mrf.mxu1 }
 0x1db   :  { %v294_v28 = vadd.f32 %v325_v26, %v293_v27 }
 0x1dc   :  { %v390_v29 = vpop.f32.mrf.mxu1 }
 0x1dd   :  { %299 = vst [vmem:[#allocation9] sm:$0xff] %v294_v28 }
 0x1de   :  { %v296_v30 = vpop.f32.mrf.mxu1 }
 0x1df   :  { %489 = shalt.err (!%p486_p5)
}
 0x1e0   :  { %309 = dma.vmem_to_hbm [thread:$0]  %s307_s12, 128, %s565_s5, [#allocation5]   ;;  %v391_v31 = vpop.f32.mrf.mxu1 }
 0x1e1   :  { %502 = dma.done.wait [#allocation5], 128  }
 0x1e2   :  { %503 = vsyncadd [#allocation5], 4294967168 }
 0x1e3   :  { %313 = vsyncpa [#allocation4], 1 }
 0x1e4   :  { %314 = vsyncpa [#allocation7], 1 }
 0x1e5   :  { %315 = vsyncpa [#allocation5], 1 }

</bundles_post_ra>
